<compile_context>
chip_gen: v7x
topology: tpu7x:2x2x1
jax: 0.10.0
libtpu: 0.0.40
codegen_flags: <defaults>
</compile_context>

<pallas_src>
import jax
import jax.numpy as jnp
from jax.experimental import pallas as pl
from jax.experimental.pallas import tpu as pltpu


def _round_up(x, m):
    return (x + m - 1) // m * m


# --------------------------------------------------------------------------
# Kernel
# --------------------------------------------------------------------------
def actor_kernel(x_ref,
                 w1_ref, b1_ref,
                 w2_ref, b2_ref,
                 w3_ref, b3_ref,
                 w4_ref, b4_ref,
                 out_ref):
    # In-kernel cast to bf16 (cheap VPU op; avoids a separate XLA cast pass).
    x = x_ref[...].astype(jnp.bfloat16)

    # Linear(n_states,128) + LeakyReLU(0.2)   (bf16 operands, f32 accumulate)
    h = jnp.dot(x, w1_ref[...], preferred_element_type=jnp.float32) + b1_ref[...]
    h = jnp.maximum(h, 0.2 * h)              # LeakyReLU: mul+max (2 VPU ops)

    # BatchNorm1d(128) is folded into w2/b2 at setup time (eval mode).
    # Linear(128,128) + Tanh   (Dropout(0.3) is identity in eval mode)
    # tanh on bf16: ~2x EUP rate on v6e/v7x; its output feeds a bf16 matmul.
    h = jnp.tanh((jnp.dot(h.astype(jnp.bfloat16), w2_ref[...],
                          preferred_element_type=jnp.float32)
                  + b2_ref[...]).astype(jnp.bfloat16))

    # Linear(128,64) + Tanh
    h = jnp.tanh((jnp.dot(h, w3_ref[...],
                          preferred_element_type=jnp.float32)
                  + b3_ref[...]).astype(jnp.bfloat16))

    # BatchNorm1d(64) folded into w4/b4.
    # Linear(64, n_actions) + Sigmoid   (narrow output, no padding)
    logits = jnp.dot(h, w4_ref[...],
                     preferred_element_type=jnp.float32) + b4_ref[...]
    out_ref[...] = jax.nn.sigmoid(logits)


# --------------------------------------------------------------------------
# Wrapper
# --------------------------------------------------------------------------
def actor_forward(x, kparams, *, block_batch=2048):
    """x: (B, n_states) float32.  kparams: output of prepare_kernel_params."""
    B, n_states = x.shape
    n_actions = kparams["n_actions"]

    # Batch tile: multiple of 8 sublanes, capped so the grid has >=2 steps
    # whenever B > 8 (lets v7x shard the "parallel" axis across both cores and
    # gives the pipeline overlap), and capped at block_batch for step-overhead
    # amortization at large B.
    TB = min(block_batch, _round_up(-(-B // 2), 8))
    TB = max(TB, 8)
    Bp = _round_up(B, TB)

    xp = x  # keep native f32; cast happens inside the kernel
    if Bp != B:
        xp = jnp.pad(xp, ((0, Bp - B), (0, 0)))

    weights = (kparams["w1"], kparams["b1"],
               kparams["w2"], kparams["b2"],
               kparams["w3"], kparams["b3"],
               kparams["w4"], kparams["b4"])

    def const_spec(a):
        # Whole-array block, constant index -> stays VMEM-resident across steps.
        return pl.BlockSpec(a.shape, lambda i: (0,) * a.ndim)

    out = pl.pallas_call(
        actor_kernel,
        out_shape=jax.ShapeDtypeStruct((Bp, n_actions), jnp.float32),
        grid=(Bp // TB,),
        in_specs=[pl.BlockSpec((TB, n_states), lambda i: (i, 0))]
                 + [const_spec(a) for a in weights],
        # Last block dim equals the full array dim -> legal narrow block; the
        # writeback DMA only moves useful bytes (no 128-lane f32 padding).
        out_specs=pl.BlockSpec((TB, n_actions), lambda i: (i, 0)),
        compiler_params=pltpu.CompilerParams(
            dimension_semantics=("parallel",)),     # megacore shard on v7x
    )(xp, *weights)

    if Bp != B:
        out = out[:B]
    return out


# --------------------------------------------------------------------------
# Parameters: PyTorch-style init, then fold / cast for the kernel.
# --------------------------------------------------------------------------
def init_actor_params(key, n_states, n_actions, dtype=jnp.float32):
    """Deterministic parameter init mirroring Actor.__init__/_init_weights."""
    ks = jax.random.split(key, 8)

    def hidden_linear(kw, kb, fan_in, fan_out):
        # Actor._init_weights: weight ~ N(0, 0.01), bias ~ U(-0.1, 0.1)
        w = 0.01 * jax.random.normal(kw, (fan_in, fan_out), dtype)
        b = jax.random.uniform(kb, (1, fan_out), dtype, minval=-0.1, maxval=0.1)
        return w, b

    w1, b1 = hidden_linear(ks[0], ks[1], n_states, 128)
    w2, b2 = hidden_linear(ks[2], ks[3], 128, 128)
    w3, b3 = hidden_linear(ks[4], ks[5], 128, 64)

    # self.out = nn.Linear(64, n_actions): default PyTorch init (+/- 1/sqrt(fan_in))
    bound = 1.0 / jnp.sqrt(64.0)
    w4 = jax.random.uniform(ks[6], (64, n_actions), dtype, minval=-bound, maxval=bound)
    b4 = jax.random.uniform(ks[7], (1, n_actions), dtype, minval=-bound, maxval=bound)

    def bn(n):
        # Fresh BatchNorm1d: gamma=1, beta=0, running_mean=0, running_var=1.
        return dict(gamma=jnp.ones((1, n), dtype), beta=jnp.zeros((1, n), dtype),
                    mean=jnp.zeros((1, n), dtype), var=jnp.ones((1, n), dtype))

    return dict(w1=w1, b1=b1, bn1=bn(128),
                w2=w2, b2=b2,
                w3=w3, b3=b3, bn2=bn(64),
                w4=w4, b4=b4)


def prepare_kernel_params(p, eps=1e-5):
    """Fold eval-mode BN into the following Linear, cast weights to bf16."""
    def bn_fold(bn_p):
        scale = bn_p["gamma"] / jnp.sqrt(bn_p["var"] + eps)
        shift = bn_p["beta"] - bn_p["mean"] * scale
        return scale, shift

    s1, t1 = bn_fold(p["bn1"])
    s2, t2 = bn_fold(p["bn2"])

    # (h*s1 + t1) @ w2 + b2  ==  h @ (diag(s1) @ w2) + (t1 @ w2 + b2)
    w2f = p["w2"] * s1.reshape(-1, 1)
    b2f = p["b2"] + t1 @ p["w2"]
    # Same fold for BN2 into the output Linear.
    w4f = p["w4"] * s2.reshape(-1, 1)
    b4f = p["b4"] + t2 @ p["w4"]

    n_actions = p["w4"].shape[1]
    bf16 = jnp.bfloat16
    return dict(
        n_actions=n_actions,
        w1=p["w1"].astype(bf16), b1=p["b1"].astype(jnp.float32),
        w2=w2f.astype(bf16),     b2=b2f.astype(jnp.float32),
        w3=p["w3"].astype(bf16), b3=b3f if (b3f := p["b3"].astype(jnp.float32)) is not None else None,
        w4=w4f.astype(bf16),     b4=b4f.astype(jnp.float32),
    )


# --------------------------------------------------------------------------
# Pure-JAX f32 reference of the same eval-mode forward (un-folded params).
# --------------------------------------------------------------------------
def actor_reference(x, p, eps=1e-5):
    def bn(h, bn_p):
        scale = bn_p["gamma"] / jnp.sqrt(bn_p["var"] + eps)
        shift = bn_p["beta"] - bn_p["mean"] * scale
        return h * scale + shift

    h = x @ p["w1"] + p["b1"]
    h = jnp.where(h > 0, h, 0.2 * h)
    h = bn(h, p["bn1"])
    h = jnp.tanh(h @ p["w2"] + p["b2"])
    h = jnp.tanh(h @ p["w3"] + p["b3"])
    h = bn(h, p["bn2"])
    return jax.nn.sigmoid(h @ p["w4"] + p["b4"])


if __name__ == "__main__":
    key = jax.random.PRNGKey(0)
    k_param, k_x = jax.random.split(key)

    B, n_states, n_actions = 8, 16, 4
    raw_params = init_actor_params(k_param, n_states, n_actions)
    kernel_params = prepare_kernel_params(raw_params)
    x = jax.random.normal(k_x, (B, n_states), jnp.float32)

    out = actor_forward(x, kernel_params)
    out = jax.block_until_ready(out)

    ref = actor_reference(x, raw_params)
    assert out.shape == (B, n_actions), out.shape
    # bf16 weights / matmul inputs / tanh -> loosened tolerance vs f32 reference
    # (intentional accuracy trade for MXU/EUP throughput).
    assert jnp.allclose(out, ref, atol=3e-2, rtol=3e-2), (out, ref)

    print("KERNEL_OK")
</pallas_src>

<mosaic_0001>
module attributes {stable_mosaic.version = 11 : i64} {
  func.func @actor_kernel(%arg0: i32, %arg1: memref<8x16xf32, #tpu.memory_space<vmem>>, %arg2: memref<16x128xbf16, #tpu.memory_space<vmem>>, %arg3: memref<1x128xf32, #tpu.memory_space<vmem>>, %arg4: memref<128x128xbf16, #tpu.memory_space<vmem>>, %arg5: memref<1x128xf32, #tpu.memory_space<vmem>>, %arg6: memref<128x64xbf16, #tpu.memory_space<vmem>>, %arg7: memref<1x64xf32, #tpu.memory_space<vmem>>, %arg8: memref<64x4xbf16, #tpu.memory_space<vmem>>, %arg9: memref<1x4xf32, #tpu.memory_space<vmem>>, %arg10: memref<8x4xf32, #tpu.memory_space<vmem>>) attributes {dimension_semantics = [#tpu.dimension_semantics<parallel>], iteration_bounds = array<i64: 1>, scalar_prefetch = 0 : i64, scratch_operands = 0 : i64, tpu.core_type = #tpu.core_type<tc>, window_params = [{transform_indices = @transform_0, window_bounds = array<i64: 8, 16>}, {pipeline_mode = #tpu.pipeline_mode<synchronous>, transform_indices = @transform_1, window_bounds = array<i64: 16, 128>}, {pipeline_mode = #tpu.pipeline_mode<synchronous>, transform_indices = @transform_2, window_bounds = array<i64: 1, 128>}, {pipeline_mode = #tpu.pipeline_mode<synchronous>, transform_indices = @transform_3, window_bounds = array<i64: 128, 128>}, {pipeline_mode = #tpu.pipeline_mode<synchronous>, transform_indices = @transform_4, window_bounds = array<i64: 1, 128>}, {pipeline_mode = #tpu.pipeline_mode<synchronous>, transform_indices = @transform_5, window_bounds = array<i64: 128, 64>}, {pipeline_mode = #tpu.pipeline_mode<synchronous>, transform_indices = @transform_6, window_bounds = array<i64: 1, 64>}, {pipeline_mode = #tpu.pipeline_mode<synchronous>, transform_indices = @transform_7, window_bounds = array<i64: 64, 4>}, {pipeline_mode = #tpu.pipeline_mode<synchronous>, transform_indices = @transform_8, window_bounds = array<i64: 1, 4>}, {transform_indices = @transform_9, window_bounds = array<i64: 8, 4>}]} {
    %c0 = arith.constant 0 : index
    %c0_0 = arith.constant 0 : index
    %0 = vector.load %arg1[%c0, %c0_0] : memref<8x16xf32, #tpu.memory_space<vmem>>, vector<8x16xf32>
    %1 = arith.truncf %0 : vector<8x16xf32> to vector<8x16xbf16>
    %c0_1 = arith.constant 0 : index
    %c0_2 = arith.constant 0 : index
    %2 = vector.load %arg2[%c0_1, %c0_2] : memref<16x128xbf16, #tpu.memory_space<vmem>>, vector<16x128xbf16>
    %cst = arith.constant dense<0.000000e+00> : vector<8x128xf32>
    %3 = tpu.matmul %1, %2, %cst {dimension_numbers = #tpu.dot_dimension_numbers<[1], [0], [0], [1], [0, 0, 1, 1], [], []>} : vector<8x16xbf16>, vector<16x128xbf16>, vector<8x128xf32> -> vector<8x128xf32>
    %c0_3 = arith.constant 0 : index
    %c0_4 = arith.constant 0 : index
    %4 = vector.load %arg3[%c0_3, %c0_4] : memref<1x128xf32, #tpu.memory_space<vmem>>, vector<1x128xf32>
    %5 = vector.broadcast %4 : vector<1x128xf32> to vector<8x128xf32>
    %6 = arith.addf %3, %5 : vector<8x128xf32>
    %cst_5 = arith.constant 2.000000e-01 : f32
    %7 = vector.broadcast %cst_5 : f32 to vector<8x128xf32>
    %8 = arith.mulf %7, %6 : vector<8x128xf32>
    %9 = arith.maximumf %6, %8 : vector<8x128xf32>
    %10 = arith.truncf %9 : vector<8x128xf32> to vector<8x128xbf16>
    %c0_6 = arith.constant 0 : index
    %c0_7 = arith.constant 0 : index
    %11 = vector.load %arg4[%c0_6, %c0_7] : memref<128x128xbf16, #tpu.memory_space<vmem>>, vector<128x128xbf16>
    %cst_8 = arith.constant dense<0.000000e+00> : vector<8x128xf32>
    %12 = tpu.matmul %10, %11, %cst_8 {dimension_numbers = #tpu.dot_dimension_numbers<[1], [0], [0], [1], [0, 0, 1, 1], [], []>} : vector<8x128xbf16>, vector<128x128xbf16>, vector<8x128xf32> -> vector<8x128xf32>
    %c0_9 = arith.constant 0 : index
    %c0_10 = arith.constant 0 : index
    %13 = vector.load %arg5[%c0_9, %c0_10] : memref<1x128xf32, #tpu.memory_space<vmem>>, vector<1x128xf32>
    %14 = vector.broadcast %13 : vector<1x128xf32> to vector<8x128xf32>
    %15 = arith.addf %12, %14 : vector<8x128xf32>
    %16 = arith.truncf %15 : vector<8x128xf32> to vector<8x128xbf16>
    %17 = math.tanh %16 : vector<8x128xbf16>
    %c0_11 = arith.constant 0 : index
    %c0_12 = arith.constant 0 : index
    %18 = vector.load %arg6[%c0_11, %c0_12] : memref<128x64xbf16, #tpu.memory_space<vmem>>, vector<128x64xbf16>
    %cst_13 = arith.constant dense<0.000000e+00> : vector<8x64xf32>
    %19 = tpu.matmul %17, %18, %cst_13 {dimension_numbers = #tpu.dot_dimension_numbers<[1], [0], [0], [1], [0, 0, 1, 1], [], []>} : vector<8x128xbf16>, vector<128x64xbf16>, vector<8x64xf32> -> vector<8x64xf32>
    %c0_14 = arith.constant 0 : index
    %c0_15 = arith.constant 0 : index
    %20 = vector.load %arg7[%c0_14, %c0_15] : memref<1x64xf32, #tpu.memory_space<vmem>>, vector<1x64xf32>
    %21 = vector.broadcast %20 : vector<1x64xf32> to vector<8x64xf32>
    %22 = arith.addf %19, %21 : vector<8x64xf32>
    %23 = arith.truncf %22 : vector<8x64xf32> to vector<8x64xbf16>
    %24 = math.tanh %23 : vector<8x64xbf16>
    %c0_16 = arith.constant 0 : index
    %c0_17 = arith.constant 0 : index
    %25 = vector.load %arg8[%c0_16, %c0_17] : memref<64x4xbf16, #tpu.memory_space<vmem>>, vector<64x4xbf16>
    %cst_18 = arith.constant dense<0.000000e+00> : vector<8x4xf32>
    %26 = tpu.matmul %24, %25, %cst_18 {dimension_numbers = #tpu.dot_dimension_numbers<[1], [0], [0], [1], [0, 0, 1, 1], [], []>} : vector<8x64xbf16>, vector<64x4xbf16>, vector<8x4xf32> -> vector<8x4xf32>
    %c0_19 = arith.constant 0 : index
    %c0_20 = arith.constant 0 : index
    %27 = vector.load %arg9[%c0_19, %c0_20] : memref<1x4xf32, #tpu.memory_space<vmem>>, vector<1x4xf32>
    %28 = vector.broadcast %27 : vector<1x4xf32> to vector<8x4xf32>
    %29 = arith.addf %26, %28 : vector<8x4xf32>
    %30 = arith.negf %29 : vector<8x4xf32>
    %31 = math.exp %30 : vector<8x4xf32>
    %cst_21 = arith.constant 1.000000e+00 : f32
    %32 = vector.broadcast %cst_21 : f32 to vector<8x4xf32>
    %33 = arith.addf %32, %31 : vector<8x4xf32>
    %34 = arith.divf %32, %33 : vector<8x4xf32>
    %c0_22 = arith.constant 0 : index
    %c0_23 = arith.constant 0 : index
    %35 = vector.load %arg10[%c0_22, %c0_23] : memref<8x4xf32, #tpu.memory_space<vmem>>, vector<8x4xf32>
    tpu.vector_store %arg10[%c0_22, %c0_23], %34 {strides = array<i32>} : memref<8x4xf32, #tpu.memory_space<vmem>>, vector<8x4xf32>,
    return
  }
  func.func @transform_0(%arg0: i32) -> (i32, i32) {
    %c0_i32 = arith.constant 0 : i32
    %c0_i32_0 = arith.constant 0 : i32
    return %arg0, %c0_i32 : i32, i32
  }
  func.func @transform_1(%arg0: i32) -> (i32, i32) {
    %c0_i32 = arith.constant 0 : i32
    %c0_i32_0 = arith.constant 0 : i32
    %c0_i32_1 = arith.constant 0 : i32
    return %c0_i32, %c0_i32_0 : i32, i32
  }
  func.func @transform_2(%arg0: i32) -> (i32, i32) {
    %c0_i32 = arith.constant 0 : i32
    %c0_i32_0 = arith.constant 0 : i32
    %c0_i32_1 = arith.constant 0 : i32
    return %c0_i32, %c0_i32_0 : i32, i32
  }
  func.func @transform_3(%arg0: i32) -> (i32, i32) {
    %c0_i32 = arith.constant 0 : i32
    %c0_i32_0 = arith.constant 0 : i32
    %c0_i32_1 = arith.constant 0 : i32
    return %c0_i32, %c0_i32_0 : i32, i32
  }
  func.func @transform_4(%arg0: i32) -> (i32, i32) {
    %c0_i32 = arith.constant 0 : i32
    %c0_i32_0 = arith.constant 0 : i32
    %c0_i32_1 = arith.constant 0 : i32
    return %c0_i32, %c0_i32_0 : i32, i32
  }
  func.func @transform_5(%arg0: i32) -> (i32, i32) {
    %c0_i32 = arith.constant 0 : i32
    %c0_i32_0 = arith.constant 0 : i32
    %c0_i32_1 = arith.constant 0 : i32
    return %c0_i32, %c0_i32_0 : i32, i32
  }
  func.func @transform_6(%arg0: i32) -> (i32, i32) {
    %c0_i32 = arith.constant 0 : i32
    %c0_i32_0 = arith.constant 0 : i32
    %c0_i32_1 = arith.constant 0 : i32
    return %c0_i32, %c0_i32_0 : i32, i32
  }
  func.func @transform_7(%arg0: i32) -> (i32, i32) {
    %c0_i32 = arith.constant 0 : i32
    %c0_i32_0 = arith.constant 0 : i32
    %c0_i32_1 = arith.constant 0 : i32
    return %c0_i32, %c0_i32_0 : i32, i32
  }
  func.func @transform_8(%arg0: i32) -> (i32, i32) {
    %c0_i32 = arith.constant 0 : i32
    %c0_i32_0 = arith.constant 0 : i32
    %c0_i32_1 = arith.constant 0 : i32
    return %c0_i32, %c0_i32_0 : i32, i32
  }
  func.func @transform_9(%arg0: i32) -> (i32, i32) {
    %c0_i32 = arith.constant 0 : i32
    %c0_i32_0 = arith.constant 0 : i32
    return %arg0, %c0_i32 : i32, i32
  }
}

</mosaic_0001>

<bundles_post_ra>
// kernel: tpu_custom_call.1
= control target key start
LH: loop header
LB: loop body
LE: loop exit
PB: predicated region body
PF: predicated region fallthrough
CT: control target
= control target key end

     0   :  { %v560_v0 = vmov 0.0   ;;  %vm561_vm0 = vmmov 0   ;;  %vm50_vm1 = vcmask 130048   ;;  %vm362_vm2 = vcmask 523264   ;;  %s722_s1 = inlined_call_operand.vmem [shape: bf16[16,128], index: 1, kind: input, shape index: {}]   ;;  %s723_s0 = inlined_call_operand.vmem [shape: f32[8,16], index: 0, kind: input, shape index: {}]   ;;  %s724_s3 = inlined_call_operand.vmem [shape: bf16[128,128], index: 3, kind: input, shape index: {}]   ;;  %s725_s5 = inlined_call_operand.vmem [shape: bf16[128,64], index: 5, kind: input, shape index: {}]   ;;  %s726_s2 = inlined_call_operand.vmem [shape: f32[1,128], index: 2, kind: input, shape index: {}]   ;;  %s727_s4 = inlined_call_operand.vmem [shape: f32[1,128], index: 4, kind: input, shape index: {}]   ;;  %s728_s7 = inlined_call_operand.vmem [shape: bf16[64,4], index: 7, kind: input, shape index: {}]   ;;  %s729_s6 = inlined_call_operand.vmem [shape: f32[1,64], index: 6, kind: input, shape index: {}]   ;;  %s730_s8 = inlined_call_operand.vmem [shape: f32[1,4], index: 8, kind: input, shape index: {}]   ;;  %s731_s9 = inlined_call_operand.vmem [shape: f32[8,4], index: 9, kind: output, shape index: {}]  }
   0x1   :  { %471 = vmatprep.subr.bf16.mxu0 %v560_v0  ;;  %v531_v1 = vld [vmem:[%s722_s1] sm:$0xff]   ;;  %473 = vmatprep.mubr.msk.bf16.mxu0 %vm561_vm0, %v560_v0  ;;  %v533_v5 = vld [vmem:[%s724_s3 + $0x8] sm:$0xff]   ;;  %v534_v6 = vld [vmem:[%s724_s3 + $0x10] sm:$0xff]   ;;  %vm412_vm3 = vcmask 31744  }
   0x2   :  { %v33_v2 = vld [vmem:[%s723_s0] sm:$0xff]  ;;  %477 = vmatprep.subr.bf16.mxu1 %v560_v0  ;;  %493 = vmatprep.mubr.msk.bf16.mxu1 %vm561_vm0, %v560_v0  ;;  %v535_v7 = vld [vmem:[%s724_s3 + $0x18] sm:$0xff]   ;;  %v537_v9 = vld [vmem:[%s724_s3 + $0x28] sm:$0xff]  }
   0x3   :  { %472 = vmatpush3.bf16.msra.mxu0 %v531_v1  ;;  %v34_v3 = vpack.c.bf16 %v33_v2, %v33_v2  ;;  %v532_v4 = vld [vmem:[%s724_s3] sm:$0xff]   ;;  %v538_v10 = vld [vmem:[%s724_s3 + $0x30] sm:$0xff]   ;;  %v539_v11 = vld [vmem:[%s724_s3 + $0x38] sm:$0xff]  }
   0x4   :  { %497 = vmatprep.subr.bf16.mxu0 %v560_v0  ;;  %478 = vmatpush3.bf16.msra.mxu1 %v532_v4  ;;  %v536_v8 = vld [vmem:[%s724_s3 + $0x20] sm:$0xff]   ;;  %v541_v13 = vld [vmem:[%s725_s5 + $0x8] sm:$0xff]   ;;  %v542_v14 = vld [vmem:[%s725_s5 + $0x10] sm:$0xff]  }
   0x5   :  { %479 = vmatprep.subr.bf16.mxu1 %v560_v0  ;;  %v540_v12 = vld [vmem:[%s725_s5] sm:$0xff]   ;;  %v543_v15 = vld [vmem:[%s725_s5 + $0x18] sm:$0xff]   ;;  %v545_v26 = vld [vmem:[%s725_s5 + $0x28] sm:$0xff]  }
   0x6   :  { %474 = vmatmul.mubr.msk.bf16.vlgmr.msra.gmra.mrb[0].mxu0 %vm50_vm1, %v34_v3  ;;  %v418_v16 = vld [vmem:[%s726_s2] ss:$0 sm:$0xff]  ;;  %v546_v27 = vld [vmem:[%s725_s5 + $0x30] sm:$0xff]   ;;  %v547_v28 = vld [vmem:[%s725_s5 + $0x38] sm:$0xff]  }
   0x7   :  { %513 = vmatprep.mubr.msk.bf16.mxu0 %vm561_vm0, %v560_v0  ;;  %498 = vmatpush3.bf16.msra.mxu0 %v540_v12  ;;  %v544_v25 = vld [vmem:[%s725_s5 + $0x20] sm:$0xff]   ;;  %v549_v38 = vld [vmem:[%s728_s7 + $0x8] sm:$0xff]   ;;  %v550_v39 = vld [vmem:[%s728_s7 + $0x10] sm:$0xff]  }
   0x8   :  { %480 = vmatpush3.bf16.msra.mxu1 %v533_v5  ;;  %499 = vmatprep.subr.bf16.mxu0 %v560_v0  ;;  %v421_v29 = vld [vmem:[%s727_s4] ss:$0 sm:$0xff]  ;;  %v551_v40 = vld [vmem:[%s728_s7 + $0x18] sm:$0xff]  }
   0x9   :  { %481 = vmatprep.subr.bf16.mxu1 %v560_v0  ;;  %v548_v37 = vld [vmem:[%s728_s7] sm:$0xff]  }
   0xa   :  { %v430_v41 = vld [vmem:[%s729_s6] ss:$0 sm:$0xff] }
   0xb   :  { %500 = vmatpush3.bf16.msra.mxu0 %v541_v13  ;;  %v439_v49 = vld [vmem:[%s730_s8] ss:$0 sm:$0xff] }
   0xc   :  { %482 = vmatpush3.bf16.msra.mxu1 %v534_v6  ;;  %501 = vmatprep.subr.bf16.mxu0 %v560_v0 }
   0xd   :  { %483 = vmatprep.subr.bf16.mxu1 %v560_v0 }
   0xf   :  { %502 = vmatpush3.bf16.msra.mxu0 %v542_v14 }
  0x10   :  { %484 = vmatpush3.bf16.msra.mxu1 %v535_v7  ;;  %503 = vmatprep.subr.bf16.mxu0 %v560_v0 }
  0x11   :  { %485 = vmatprep.subr.bf16.mxu1 %v560_v0 }
  0x13   :  { %504 = vmatpush3.bf16.msra.mxu0 %v543_v15 }
  0x14   :  { %486 = vmatpush3.bf16.msra.mxu1 %v536_v8  ;;  %505 = vmatprep.subr.bf16.mxu0 %v560_v0 }
  0x15   :  { %487 = vmatprep.subr.bf16.mxu1 %v560_v0 }
  0x17   :  { %506 = vmatpush3.bf16.msra.mxu0 %v544_v25 }
  0x18   :  { %488 = vmatpush3.bf16.msra.mxu1 %v537_v9  ;;  %507 = vmatprep.subr.bf16.mxu0 %v560_v0 }
  0x19   :  { %489 = vmatprep.subr.bf16.mxu1 %v560_v0 }
  0x1b   :  { %508 = vmatpush3.bf16.msra.mxu0 %v545_v26 }
  0x1c   :  { %490 = vmatpush3.bf16.msra.mxu1 %v538_v10  ;;  %509 = vmatprep.subr.bf16.mxu0 %v560_v0 }
  0x1d   :  { %491 = vmatprep.subr.bf16.mxu1 %v560_v0 }
  0x1f   :  { %510 = vmatpush3.bf16.msra.mxu0 %v546_v27 }
  0x20   :  { %492 = vmatpush3.bf16.msra.mxu1 %v539_v11  ;;  %511 = vmatprep.subr.bf16.mxu0 %v560_v0 }
  0x21   :  { %517 = vmatprep.subr.bf16.mxu1 %v560_v0 }
  0x23   :  { %512 = vmatpush3.bf16.msra.mxu0 %v547_v28 }
  0xd9   :  { %v88_v17 = vpop.f32.mrb[0].mxu0 }
  0xda   :  { %v89_v18 = vadd.f32 %v418_v16, %v88_v17  ;;  %v475_v19 = vpop.f32.mrb[1].mxu0 }
  0xdb   :  { %v91_v20 = vpop.f32.mrb[2].mxu0 }
  0xdc   :  { %v94_v21 = vmul.f32 0.2, %v89_v18  ;;  %v476_v22 = vpop.f32.mrb[3].mxu0 }
  0xde   :  { %v95_v23 = vmax.f32 %v89_v18, %v94_v21 }
  0xe0   :  { %v96_v24 = vpack.c.bf16 %v95_v23, %v95_v23 }
  0xe2   :  { %494 = vmatmul.mubr.bf16.vlgmr.msra.gmra.mrb[0].mxu1 %v96_v24 }
  0xe3   :  { %525 = vmatprep.mubr.msk.bf16.mxu1 %vm561_vm0, %v560_v0  ;;  %518 = vmatpush3.bf16.msra.mxu1 %v548_v37 }
  0xe4   :  { %519 = vmatprep.subr.bf16.mxu1 %v560_v0 }
  0xe7   :  { %520 = vmatpush3.bf16.msra.mxu1 %v549_v38 }
  0xe8   :  { %521 = vmatprep.subr.bf16.mxu1 %v560_v0 }
  0xeb   :  { %522 = vmatpush3.bf16.msra.mxu1 %v550_v39 }
  0xec   :  { %523 = vmatprep.subr.bf16.mxu1 %v560_v0 }
  0xef   :  { %524 = vmatpush3.bf16.msra.mxu1 %v551_v40 }
 0x1b5   :  { %v202_v30 = vpop.f32.mrb[0].mxu1 }
 0x1b6   :  { %v203_v31 = vadd.f32 %v421_v29, %v202_v30  ;;  %v495_v32 = vpop.f32.mrb[1].mxu1 }
 0x1b7   :  { %v205_v33 = vpop.f32.mrb[2].mxu1 }
 0x1b8   :  { %v208_v34 = vpack.c.bf16 %v203_v31, %v203_v31  ;;  %v496_v35 = vpop.f32.mrb[3].mxu1 }
 0x1ba   :  { %552 = vtanh.bf16 %v208_v34 }
 0x1c5   :  { %v553_v36 = vpop.eup %552 }
 0x1c6   :  { %514 = vmatmul.mubr.bf16.vlgmr.msra.gmra.mrb[4].mxu0 %v553_v36 }
 0x299   :  { %v315_v42 = vpop.f32.mrb[4].mxu0 }
 0x29a   :  { %v316_v43 = vadd.f32 %v430_v41, %v315_v42  ;;  %v515_v44 = vpop.f32.mrb[5].mxu0 }
 0x29b   :  { %v318_v45 = vpop.f32.mrb[6].mxu0 }
 0x29c   :  { %v321_v46 = vpack.c.bf16 %v316_v43, %v316_v43  ;;  %v516_v47 = vpop.f32.mrb[7].mxu0 }
 0x29e   :  { %554 = vtanh.bf16 %v321_v46 }
 0x2a9   :  { %v555_v48 = vpop.eup %554 }
 0x2aa   :  { %526 = vmatmul.mubr.msk.bf16.vlgmr.msra.gmra.mrb[4].mxu1 %vm362_vm2, %v555_v48 }
 0x37d   :  { %v400_v50 = vpop.f32.mrb[4].mxu1 }
 0x37e   :  { %v401_v51 = vadd.f32 %v439_v49, %v400_v50  ;;  %v527_v52 = vpop.f32.mrb[5].mxu1 }
 0x37f   :  { %v403_v53 = vpop.f32.mrb[6].mxu1 }
 0x380   :  { %v445_v54 = vmul.f32 -1.442695, %v401_v51  ;;  %v528_v55 = vpop.f32.mrb[7].mxu1 }
 0x382   :  { %556 = vpow2.f32 %v445_v54 }
 0x38c   :  { %v557_v56 = vpop.eup %556 }
 0x38d   :  { %v409_v57 = vadd.f32 1.0, %v557_v56 }
 0x38f   :  { %558 = vrcp.f32 %v409_v57 }
 0x399   :  { %v559_v58 = vpop.eup %558 }
 0x39a   :  { %413 = vst.msk [vmem:[%s731_s9] sm:$0xff] %vm412_vm3, %v559_v58 }

</bundles_post_ra>
